<compile_context>
chip_gen: v7x
topology: tpu7x:2x2x1
jax: 0.10.0
libtpu: 0.0.40
codegen_flags: <defaults>
</compile_context>

<pallas_src>
import itertools
import math

import jax
import jax.numpy as jnp
import numpy as np
from jax.experimental import pallas as pl
from jax.experimental.pallas import tpu as pltpu


def _make_full_tucker_kernel(M, lead_ranks, rM_pad):
    """Kernel factory.

    Kernel refs: X_1..X_M, U_1^T..U_M^T (rank-padded), W (=U0@G1, col-padded),
                 Z (output), KR scratch (VMEM).
    """
    # Row stride inside the KR scratch for each leading-rank index
    # (last rank padded to rM_pad so every block lands on an 8-aligned sublane).
    strides = []
    for m in range(len(lead_ranks)):
        s = rM_pad
        for r in lead_ranks[m + 1:]:
            s *= r
        strides.append(s)

    def kernel(*refs):
        x_refs = refs[:M]
        uT_refs = refs[M:2 * M]
        w_ref = refs[2 * M]
        z_ref = refs[2 * M + 1]
        kr_ref = refs[2 * M + 2]

        # Stage 1: UX_m = U_m^T @ X_m  -> (r_m_pad, B_TILE), f32 accumulation on MXU.
        ux = [jnp.dot(uT_refs[m][...], x_refs[m][...],
                      preferred_element_type=jnp.float32)
              for m in range(M)]

        # Stage 2: materialize the Khatri-Rao product into VMEM scratch.
        # Statically unrolled over the (real) leading-rank multi-index; each
        # iteration is one broadcast multiply + one aligned sublane-block store.
        for idx in itertools.product(*(range(r) for r in lead_ranks)):
            scale = None
            off = 0
            for m, i in enumerate(idx):
                row = ux[m][i:i + 1, :]                       # (1, B_TILE)
                scale = row if scale is None else scale * row
                off += i * strides[m]
            block = ux[-1] if scale is None else ux[-1] * scale   # (rM_pad, B_TILE)
            kr_ref[off:off + rM_pad, :] = block

        # Stage 3: single matmul  Z = (U0 @ G_(0)) @ KR(UX).
        z_ref[...] = jnp.dot(w_ref[...], kr_ref[...],
                             preferred_element_type=jnp.float32).astype(z_ref.dtype)

    return kernel


def full_tucker_forward(X_list, U_list, G, *, batch_first=False):
    """Pallas implementation of FullTucker.forward.

    X_list[m]: (d_{m+1}, B)   (or (B, d_{m+1}) if batch_first)
    U_list[i]: (full_tensor_dims[i], rank[i])
    G: core tensor with shape == rank
    Returns Z: (d0, B)        (or (B, d0) if batch_first)
    """
    if batch_first:
        X_list = [x.T for x in X_list]

    ranks = tuple(G.shape)
    r0, in_ranks = ranks[0], ranks[1:]
    d0 = U_list[0].shape[0]
    M = len(X_list)
    assert M == len(in_ranks)
    B = X_list[0].shape[-1]
    out_dtype = X_list[0].dtype

    def pad8(n):
        return ((n + 7) // 8) * 8

    rM = in_ranks[-1]
    rM_pad = pad8(rM)
    lead_ranks = tuple(in_ranks[:-1])
    kr_rows = rM_pad
    for r in lead_ranks:
        kr_rows *= r

    # ---- host-side glue (tiny constant folds) -------------------------------
    # Fold U0 into the mode-0 unfolded core, then pad the last-rank axis so its
    # columns line up with the 8-aligned KR blocks written in the kernel.
    # NOTE: for production-size d_i / B, cast these (and X) to bfloat16 here;
    # accumulation inside the kernel stays f32.
    W = (U_list[0] @ G.reshape(r0, -1)).astype(jnp.float32)      # (d0, prod(in_ranks))
    W = W.reshape((d0,) + tuple(in_ranks))
    W = jnp.pad(W, [(0, 0)] * M + [(0, rM_pad - rM)])
    W = W.reshape(d0, kr_rows)

    # Pre-transposed, rank-padded factor matrices (r_pad, d_m).
    UT = []
    for m in range(M):
        r_m = in_ranks[m]
        r_p = rM_pad if m == M - 1 else pad8(r_m)
        uT = U_list[m + 1].T.astype(jnp.float32)
        uT = jnp.pad(uT, ((0, r_p - r_m), (0, 0)))
        UT.append(uT)

    # Lane-dense batch: pad to a multiple of 128, then tile over it.
    B_pad = ((B + 127) // 128) * 128
    B_TILE = 128
    for cand in (1024, 512, 256, 128):
        if B_pad % cand == 0:
            B_TILE = cand
            break
    Xp = [jnp.pad(x.astype(jnp.float32), ((0, 0), (0, B_pad - B))) for x in X_list]

    grid = (B_pad // B_TILE,)

    def batch_spec(rows):
        return pl.BlockSpec((rows, B_TILE), lambda b: (0, b))

    def resident_spec(shape):
        nd = len(shape)
        return pl.BlockSpec(shape, lambda b, _nd=nd: (0,) * _nd)

    in_specs = ([batch_spec(x.shape[0]) for x in Xp]
                + [resident_spec(u.shape) for u in UT]
                + [resident_spec(W.shape)])
    out_specs = batch_spec(d0)

    kernel = _make_full_tucker_kernel(M, lead_ranks, rM_pad)

    z = pl.pallas_call(
        kernel,
        out_shape=jax.ShapeDtypeStruct((d0, B_pad), out_dtype),
        grid=grid,
        in_specs=in_specs,
        out_specs=out_specs,
        scratch_shapes=[pltpu.VMEM((kr_rows, B_TILE), jnp.float32)],
        compiler_params=pltpu.CompilerParams(
            dimension_semantics=("parallel",)),
    )(*Xp, *UT, W)

    z = z[:, :B]
    return z.T if batch_first else z


def full_tucker_reference(X_list, U_list, G, *, batch_first=False):
    """Pure-JAX reference mirroring the PyTorch module (khatri_rao + unfold)."""
    if batch_first:
        X_list = [x.T for x in X_list]
    UX = [U_list[m + 1].T @ X_list[m] for m in range(len(X_list))]
    kr = UX[0]
    for m in UX[1:]:
        kr = (kr[:, None, :] * m[None, :, :]).reshape(-1, kr.shape[-1])
    G1 = G.reshape(G.shape[0], -1)
    Z = U_list[0] @ (G1 @ kr)
    return Z.T if batch_first else Z


def xavier_init(key, shape):
    fan_in, fan_out = shape[-1], shape[0]
    limit = math.sqrt(6.0 / (fan_in + fan_out))
    return jax.random.uniform(key, shape, jnp.float32, -limit, limit)


if __name__ == "__main__":
    key = jax.random.PRNGKey(0)

    # full_tensor_dims = [joint embedding dim d0, input feature dims d1, d2]
    full_tensor_dims = [32, 16, 24]
    rank = [8, 6, 5]
    B = 8  # batch size (batch_first=False -> batch is the LAST axis)

    n_modes = len(full_tensor_dims)
    keys = jax.random.split(key, 1 + n_modes + (n_modes - 1))

    # deterministic parameter init (xavier-style), mirroring FullTucker.__init__
    G = xavier_init(keys[0], tuple(rank))
    U = [xavier_init(keys[1 + i], (full_tensor_dims[i], rank[i]))
         for i in range(n_modes)]

    # inputs: X_i of shape (d_i, B)
    X1 = jax.random.normal(keys[1 + n_modes], (full_tensor_dims[1], B), jnp.float32)
    X2 = jax.random.normal(keys[2 + n_modes], (full_tensor_dims[2], B), jnp.float32)

    Z = full_tucker_forward([X1, X2], U, G, batch_first=False)
    Z = jax.block_until_ready(Z)

    Z_ref = full_tucker_reference([X1, X2], U, G, batch_first=False)
    assert Z.shape == (full_tensor_dims[0], B)
    np.testing.assert_allclose(np.asarray(Z), np.asarray(Z_ref), rtol=2e-5, atol=2e-5)

    print("KERNEL_OK")
</pallas_src>

<mosaic_0001>
module attributes {stable_mosaic.version = 11 : i64} {
  func.func @kernel(%arg0: i32, %arg1: memref<16x128xf32, #tpu.memory_space<vmem>>, %arg2: memref<24x128xf32, #tpu.memory_space<vmem>>, %arg3: memref<8x16xf32, #tpu.memory_space<vmem>>, %arg4: memref<8x24xf32, #tpu.memory_space<vmem>>, %arg5: memref<32x48xf32, #tpu.memory_space<vmem>>, %arg6: memref<32x128xf32, #tpu.memory_space<vmem>>, %arg7: memref<48x128xf32, #tpu.memory_space<vmem>>) attributes {dimension_semantics = [#tpu.dimension_semantics<parallel>], iteration_bounds = array<i64: 1>, scalar_prefetch = 0 : i64, scratch_operands = 1 : i64, tpu.core_type = #tpu.core_type<tc>, window_params = [{transform_indices = @transform_0, window_bounds = array<i64: 16, 128>}, {transform_indices = @transform_1, window_bounds = array<i64: 24, 128>}, {pipeline_mode = #tpu.pipeline_mode<synchronous>, transform_indices = @transform_2, window_bounds = array<i64: 8, 16>}, {pipeline_mode = #tpu.pipeline_mode<synchronous>, transform_indices = @transform_3, window_bounds = array<i64: 8, 24>}, {pipeline_mode = #tpu.pipeline_mode<synchronous>, transform_indices = @transform_4, window_bounds = array<i64: 32, 48>}, {transform_indices = @transform_5, window_bounds = array<i64: 32, 128>}]} {
    %c0 = arith.constant 0 : index
    %c0_0 = arith.constant 0 : index
    %0 = vector.load %arg3[%c0, %c0_0] : memref<8x16xf32, #tpu.memory_space<vmem>>, vector<8x16xf32>
    %c0_1 = arith.constant 0 : index
    %c0_2 = arith.constant 0 : index
    %1 = vector.load %arg1[%c0_1, %c0_2] : memref<16x128xf32, #tpu.memory_space<vmem>>, vector<16x128xf32>
    %cst = arith.constant dense<0.000000e+00> : vector<8x128xf32>
    %2 = tpu.matmul %0, %1, %cst {dimension_numbers = #tpu.dot_dimension_numbers<[1], [0], [0], [1], [0, 0, 1, 1], [], []>} : vector<8x16xf32>, vector<16x128xf32>, vector<8x128xf32> -> vector<8x128xf32>
    %c0_3 = arith.constant 0 : index
    %c0_4 = arith.constant 0 : index
    %3 = vector.load %arg4[%c0_3, %c0_4] : memref<8x24xf32, #tpu.memory_space<vmem>>, vector<8x24xf32>
    %c0_5 = arith.constant 0 : index
    %c0_6 = arith.constant 0 : index
    %4 = vector.load %arg2[%c0_5, %c0_6] : memref<24x128xf32, #tpu.memory_space<vmem>>, vector<24x128xf32>
    %cst_7 = arith.constant dense<0.000000e+00> : vector<8x128xf32>
    %5 = tpu.matmul %3, %4, %cst_7 {dimension_numbers = #tpu.dot_dimension_numbers<[1], [0], [0], [1], [0, 0, 1, 1], [], []>} : vector<8x24xf32>, vector<24x128xf32>, vector<8x128xf32> -> vector<8x128xf32>
    %6 = vector.extract_strided_slice %2 {offsets = [0, 0], sizes = [1, 128], strides = [1, 1]} : vector<8x128xf32> to vector<1x128xf32>
    %7 = vector.broadcast %6 : vector<1x128xf32> to vector<8x128xf32>
    %8 = arith.mulf %5, %7 : vector<8x128xf32>
    %c0_8 = arith.constant 0 : index
    %c0_9 = arith.constant 0 : index
    %9 = vector.load %arg7[%c0_8, %c0_9] : memref<48x128xf32, #tpu.memory_space<vmem>>, vector<8x128xf32>
    tpu.vector_store %arg7[%c0_8, %c0_9], %8 {strides = array<i32>} : memref<48x128xf32, #tpu.memory_space<vmem>>, vector<8x128xf32>,
    %10 = vector.extract_strided_slice %2 {offsets = [1, 0], sizes = [1, 128], strides = [1, 1]} : vector<8x128xf32> to vector<1x128xf32>
    %11 = vector.broadcast %10 : vector<1x128xf32> to vector<8x128xf32>
    %12 = arith.mulf %5, %11 : vector<8x128xf32>
    %c8 = arith.constant 8 : index
    %c0_10 = arith.constant 0 : index
    %13 = vector.load %arg7[%c8, %c0_10] : memref<48x128xf32, #tpu.memory_space<vmem>>, vector<8x128xf32>
    tpu.vector_store %arg7[%c8, %c0_10], %12 {strides = array<i32>} : memref<48x128xf32, #tpu.memory_space<vmem>>, vector<8x128xf32>,
    %14 = vector.extract_strided_slice %2 {offsets = [2, 0], sizes = [1, 128], strides = [1, 1]} : vector<8x128xf32> to vector<1x128xf32>
    %15 = vector.broadcast %14 : vector<1x128xf32> to vector<8x128xf32>
    %16 = arith.mulf %5, %15 : vector<8x128xf32>
    %c16 = arith.constant 16 : index
    %c0_11 = arith.constant 0 : index
    %17 = vector.load %arg7[%c16, %c0_11] : memref<48x128xf32, #tpu.memory_space<vmem>>, vector<8x128xf32>
    tpu.vector_store %arg7[%c16, %c0_11], %16 {strides = array<i32>} : memref<48x128xf32, #tpu.memory_space<vmem>>, vector<8x128xf32>,
    %18 = vector.extract_strided_slice %2 {offsets = [3, 0], sizes = [1, 128], strides = [1, 1]} : vector<8x128xf32> to vector<1x128xf32>
    %19 = vector.broadcast %18 : vector<1x128xf32> to vector<8x128xf32>
    %20 = arith.mulf %5, %19 : vector<8x128xf32>
    %c24 = arith.constant 24 : index
    %c0_12 = arith.constant 0 : index
    %21 = vector.load %arg7[%c24, %c0_12] : memref<48x128xf32, #tpu.memory_space<vmem>>, vector<8x128xf32>
    tpu.vector_store %arg7[%c24, %c0_12], %20 {strides = array<i32>} : memref<48x128xf32, #tpu.memory_space<vmem>>, vector<8x128xf32>,
    %22 = vector.extract_strided_slice %2 {offsets = [4, 0], sizes = [1, 128], strides = [1, 1]} : vector<8x128xf32> to vector<1x128xf32>
    %23 = vector.broadcast %22 : vector<1x128xf32> to vector<8x128xf32>
    %24 = arith.mulf %5, %23 : vector<8x128xf32>
    %c32 = arith.constant 32 : index
    %c0_13 = arith.constant 0 : index
    %25 = vector.load %arg7[%c32, %c0_13] : memref<48x128xf32, #tpu.memory_space<vmem>>, vector<8x128xf32>
    tpu.vector_store %arg7[%c32, %c0_13], %24 {strides = array<i32>} : memref<48x128xf32, #tpu.memory_space<vmem>>, vector<8x128xf32>,
    %26 = vector.extract_strided_slice %2 {offsets = [5, 0], sizes = [1, 128], strides = [1, 1]} : vector<8x128xf32> to vector<1x128xf32>
    %27 = vector.broadcast %26 : vector<1x128xf32> to vector<8x128xf32>
    %28 = arith.mulf %5, %27 : vector<8x128xf32>
    %c40 = arith.constant 40 : index
    %c0_14 = arith.constant 0 : index
    %29 = vector.load %arg7[%c40, %c0_14] : memref<48x128xf32, #tpu.memory_space<vmem>>, vector<8x128xf32>
    tpu.vector_store %arg7[%c40, %c0_14], %28 {strides = array<i32>} : memref<48x128xf32, #tpu.memory_space<vmem>>, vector<8x128xf32>,
    %c0_15 = arith.constant 0 : index
    %c0_16 = arith.constant 0 : index
    %30 = vector.load %arg5[%c0_15, %c0_16] : memref<32x48xf32, #tpu.memory_space<vmem>>, vector<32x48xf32>
    %c0_17 = arith.constant 0 : index
    %c0_18 = arith.constant 0 : index
    %31 = vector.load %arg7[%c0_17, %c0_18] : memref<48x128xf32, #tpu.memory_space<vmem>>, vector<48x128xf32>
    %cst_19 = arith.constant dense<0.000000e+00> : vector<32x128xf32>
    %32 = tpu.matmul %30, %31, %cst_19 {dimension_numbers = #tpu.dot_dimension_numbers<[1], [0], [0], [1], [0, 0, 1, 1], [], []>} : vector<32x48xf32>, vector<48x128xf32>, vector<32x128xf32> -> vector<32x128xf32>
    %c0_20 = arith.constant 0 : index
    %c0_21 = arith.constant 0 : index
    %33 = vector.load %arg6[%c0_20, %c0_21] : memref<32x128xf32, #tpu.memory_space<vmem>>, vector<32x128xf32>
    tpu.vector_store %arg6[%c0_20, %c0_21], %32 {strides = array<i32>} : memref<32x128xf32, #tpu.memory_space<vmem>>, vector<32x128xf32>,
    return
  }
  func.func @transform_0(%arg0: i32) -> (i32, i32) {
    %c0_i32 = arith.constant 0 : i32
    %c0_i32_0 = arith.constant 0 : i32
    return %c0_i32, %arg0 : i32, i32
  }
  func.func @transform_1(%arg0: i32) -> (i32, i32) {
    %c0_i32 = arith.constant 0 : i32
    %c0_i32_0 = arith.constant 0 : i32
    return %c0_i32, %arg0 : i32, i32
  }
  func.func @transform_2(%arg0: i32) -> (i32, i32) {
    %c0_i32 = arith.constant 0 : i32
    %c0_i32_0 = arith.constant 0 : i32
    %c0_i32_1 = arith.constant 0 : i32
    return %c0_i32, %c0_i32_0 : i32, i32
  }
  func.func @transform_3(%arg0: i32) -> (i32, i32) {
    %c0_i32 = arith.constant 0 : i32
    %c0_i32_0 = arith.constant 0 : i32
    %c0_i32_1 = arith.constant 0 : i32
    return %c0_i32, %c0_i32_0 : i32, i32
  }
  func.func @transform_4(%arg0: i32) -> (i32, i32) {
    %c0_i32 = arith.constant 0 : i32
    %c0_i32_0 = arith.constant 0 : i32
    %c0_i32_1 = arith.constant 0 : i32
    return %c0_i32, %c0_i32_0 : i32, i32
  }
  func.func @transform_5(%arg0: i32) -> (i32, i32) {
    %c0_i32 = arith.constant 0 : i32
    %c0_i32_0 = arith.constant 0 : i32
    return %c0_i32, %arg0 : i32, i32
  }
}

</mosaic_0001>

<bundles_post_ra>
// kernel: tpu_custom_call.1
= control target key start
LH: loop header
LB: loop body
LE: loop exit
PB: predicated region body
PF: predicated region fallthrough
CT: control target
= control target key end

     0   :  { %10 = vsyncpa [#allocation4], 0  ;;  %s732_s0 = inlined_call_operand.hbm [shape: f32[16,128], index: 0, kind: input, shape index: {}]   ;;  %s733_s1 = inlined_call_operand.hbm [shape: f32[24,128], index: 1, kind: input, shape index: {}]   ;;  %s734_s2 = inlined_call_operand.hbm [shape: f32[8,16], index: 2, kind: input, shape index: {}]   ;;  %s735_s3 = inlined_call_operand.vmem [shape: f32[8,24], index: 3, kind: input, shape index: {}]   ;;  %s736_s4 = inlined_call_operand.hbm [shape: f32[32,48], index: 4, kind: input, shape index: {}]   ;;  %s737_s5 = inlined_call_operand.hbm [shape: f32[32,128], index: 5, kind: output, shape index: {}]  }
   0x1   :  { %11 = vsyncpa [#allocation7], 0 }
   0x2   :  { %12 = vsyncpa [#allocation10], 0 }
   0x3   :  { %13 = vsyncpa [#allocation5], 0  ;;  %s599_s18 = smov [#allocation6]   ;;  %s600_s20 = smov [#allocation3]  }
   0x4   :  { %s31_s19 = sshll.u32 %s599_s18, 4  ;;  %s19_s21 = sshll.u32 %s600_s20, 4  ;;  %s32_s19 = int_to_ptr.vmem [resolvable:$true] %s31_s19  ;;  %s639_s21 = int_to_ptr.vmem [resolvable:$true] %s19_s21 }
   0x5   :  { %s481_s24 = scalar_lea.hbm %s733_s1, 384 }
   0x6   :  { %p482_p0 = scmp.ne.s32.totalorder %s733_s1, %s481_s24  ;;  %p485_p1 = scmp.lt.u32.totalorder %s481_s24, %s733_s1 }
   0x8   :  { %p487_p2 = pnand %p485_p1, %p482_p0 }
   0xa   :  { %490 = shalt.err (!%p487_p2)
}
   0xb   :  { %s491_s29 = scalar_lea.vmem %s32_s19, 384  ;;  %p496_p4 = scmp.lt.s32.totalorder %s32_s19, %s32_s19 }
   0xc   :  { %p492_p3 = scmp.ne.s32.totalorder %s32_s19, %s491_s29  ;;  %p497_p5 = scmp.lt.s32.totalorder %s491_s29, %s491_s29 }
   0xe   :  { %p498_p6 = por %p497_p5, %p496_p4 }
  0x10   :  { %p499_p7 = pnand %p498_p6, %p492_p3 }
  0x12   :  { %502 = shalt.err (!%p499_p7)
}
  0x13   :  { %s601_s30 = smov 128   ;;  %s602_s6 = smov 8  }
  0x14   :  { %37 = dma.hbm_to_vmem [thread:$0]  %s733_s1, 384, %s32_s19, [#allocation7], %s601_s30, %s601_s30, %s602_s6  }
  0x15   :  { %s503_s11 = scalar_lea.hbm %s732_s0, 256 }
  0x16   :  { %p504_p8 = scmp.ne.s32.totalorder %s732_s0, %s503_s11  ;;  %p507_p9 = scmp.lt.u32.totalorder %s503_s11, %s732_s0 }
  0x18   :  { %p509_p10 = pnand %p507_p9, %p504_p8 }
  0x1a   :  { %512 = shalt.err (!%p509_p10)
}
  0x1b   :  { %s513_s16 = scalar_lea.vmem %s639_s21, 256  ;;  %p518_p12 = scmp.lt.s32.totalorder %s639_s21, %s639_s21 }
  0x1c   :  { %p514_p11 = scmp.ne.s32.totalorder %s639_s21, %s513_s16  ;;  %p519_p13 = scmp.lt.s32.totalorder %s513_s16, %s513_s16 }
  0x1e   :  { %p520_p0 = por %p519_p13, %p518_p12 }
  0x20   :  { %p521_p1 = pnand %p520_p0, %p514_p11 }
  0x22   :  { %524 = shalt.err (!%p521_p1)
}
  0x23   :  { %25 = dma.hbm_to_vmem [thread:$0]  %s732_s0, 256, %s639_s21, [#allocation4], %s601_s30, %s601_s30, %s602_s6  }
  0x24   :  { %s603_s18 = smov [#allocation8]   ;;  %s604_s20 = smov [#allocation9]  }
  0x25   :  { %s44_s19 = sshll.u32 %s603_s18, 4  ;;  %s55_s22 = sshll.u32 %s604_s20, 4  ;;  %s45_s19 = int_to_ptr.vmem [resolvable:$true] %s44_s19  ;;  %s676_s22 = int_to_ptr.vmem [resolvable:$true] %s55_s22 }
  0x26   :  { %s525_s25 = scalar_lea.hbm %s734_s2, 128 }
  0x27   :  { %p526_p2 = scmp.ne.s32.totalorder %s734_s2, %s525_s25  ;;  %p529_p3 = scmp.lt.u32.totalorder %s525_s25, %s734_s2 }
  0x29   :  { %p531_p4 = pnand %p529_p3, %p526_p2 }
  0x2b   :  { %534 = shalt.err (!%p531_p4)
}
  0x2c   :  { %s535_s0 = scalar_lea.vmem %s45_s19, 128  ;;  %p540_p6 = scmp.lt.s32.totalorder %s45_s19, %s45_s19 }
  0x2d   :  { %p536_p5 = scmp.ne.s32.totalorder %s45_s19, %s535_s0  ;;  %p541_p7 = scmp.lt.s32.totalorder %s535_s0, %s535_s0 }
  0x2f   :  { %p542_p8 = por %p541_p7, %p540_p6 }
  0x31   :  { %p543_p9 = pnand %p542_p8, %p536_p5 }
  0x33   :  { %546 = shalt.err (!%p543_p9)
}
  0x34   :  { %47 = dma.hbm_to_vmem [thread:$0]  %s734_s2, 128, %s45_s19, [#allocation7]  }
  0x35   :  { %s547_s10 = scalar_lea.hbm %s736_s4, 512 }
  0x36   :  { %p548_p10 = scmp.ne.s32.totalorder %s736_s4, %s547_s10  ;;  %p551_p11 = scmp.lt.u32.totalorder %s547_s10, %s736_s4 }
  0x38   :  { %p553_p12 = pnand %p551_p11, %p548_p10 }
  0x3a   :  { %556 = shalt.err (!%p553_p12)
}
  0x3b   :  { %s557_s15 = scalar_lea.vmem %s676_s22, 512  ;;  %p562_p0 = scmp.lt.s32.totalorder %s676_s22, %s676_s22 }
  0x3c   :  { %p558_p13 = scmp.ne.s32.totalorder %s676_s22, %s557_s15  ;;  %p563_p1 = scmp.lt.s32.totalorder %s557_s15, %s557_s15 }
  0x3e   :  { %p564_p2 = por %p563_p1, %p562_p0 }
  0x40   :  { %p565_p3 = pnand %p564_p2, %p558_p13 }
  0x42   :  { %568 = shalt.err (!%p565_p3)
}
  0x43   :  { %61 = dma.hbm_to_vmem [thread:$0]  %s736_s4, 512, %s676_s22, [#allocation10], %s601_s30, %s601_s30, %s602_s6  }
  0x44   :  { %591 = dma.done.wait [#allocation4], 256  }
  0x45   :  { %592 = vsyncadd [#allocation4], 4294967040 }
  0x46   :  { %593 = dma.done.wait [#allocation7], 512  }
  0x47   :  { %594 = vsyncadd [#allocation7], 4294966784 }
  0x48   :  { %595 = dma.done.wait [#allocation10], 512  }
  0x49   :  { %596 = vsyncadd [#allocation10], 4294966784  ;;  %v605_v0 = vmov 0.0|0.0   ;;  %vm606_vm0 = vmmov 0   ;;  %v607_v1 = vmov 0.0   ;;  %v75_v2 = vld [vmem:[#allocation3] sm:$0xff]  ;;  %v229_v12 = vlaneseq }
  0x4a   :  { %453 = vmatprep.subr.bf16.mxu1 %v605_v0  ;;  %423 = vmatprep.mubr.msk.f32.mxu1 %vm606_vm0, %v607_v1  ;;  %v76_v3 = vld [vmem:[#allocation3 + $0x8] sm:$0xff]  ;;  %v152_v5 = vld [vmem:[#allocation6] sm:$0xff]  ;;  %v153_v6 = vld [vmem:[#allocation6 + $0x8] sm:$0xff]  ;;  %vm77_vm1 = vcmask 130048   ;;  %vm155_vm2 = vcmask 195584   ;;  %vm275_vm3 = vcmask 392192  }
  0x4b   :  { %v454_v4 = vpack.c.bf16 %v76_v3, %v75_v2  ;;  %v74_v7 = vld [vmem:[#allocation8] sm:$0xff]  ;;  %v457_v8 = vpack.c.bf16 %v153_v6, %v152_v5  ;;  %v154_v9 = vld [vmem:[#allocation6 + $0x10] sm:$0xff]  ;;  %v265_v11 = vld [vmem:[#allocation9] sm:$0xff]  ;;  %v230_v13 = vshrl.u32 %v229_v12, 7 }
  0x4c   :  { %v151_v10 = vld [vmem:[%s735_s3] sm:$0xff]  ;;  %447 = vmatprep.mubr.msk.f32.mxu0 %vm275_vm3, %v265_v11  ;;  %v266_v39 = vld [vmem:[#allocation9 + $0x8] sm:$0xff]  ;;  %v268_v41 = vld [vmem:[#allocation9 + $0x18] sm:$0xff]  ;;  %s608_s3 = smov [#allocation11]  }
  0x4d   :  { %455 = vmatpush3.bf16.msra.mxu1 %v454_v4  ;;  %v231_v16 = vsub.s32 0, %v230_v13  ;;  %v237_v17 = vsub.s32 1, %v230_v13  ;;  %v243_v18 = vsub.s32 2, %v230_v13  ;;  %v249_v19 = vsub.s32 3, %v230_v13  ;;  %v267_v40 = vld [vmem:[#allocation9 + $0x10] sm:$0xff]  ;;  %s382_s17 = sshll.u32 %s608_s3, 4  ;;  %s383_s17 = int_to_ptr.vmem [resolvable:$true] %s382_s17 }
  0x4e   :  { %456 = vmatprep.subr.bf16.mxu1 %v605_v0  ;;  %v255_v20 = vsub.s32 4, %v230_v13  ;;  %v261_v21 = vsub.s32 5, %v230_v13  ;;  %s569_s18 = scalar_lea.vmem %s383_s17, 512  ;;  %p574_p5 = scmp.lt.s32.totalorder %s383_s17, %s383_s17 }
  0x4f   :  { %p570_p4 = scmp.ne.s32.totalorder %s383_s17, %s569_s18  ;;  %p575_p6 = scmp.lt.s32.totalorder %s569_s18, %s569_s18 }
  0x50   :  { %424 = vmatmul.mubr.msk.f32.vlgmr.msra.gmra.mrb[0].mxu1 %vm77_vm1, %v74_v7 }
  0x51   :  { %458 = vmatpush3.bf16.msra.mxu1 %v457_v8  ;;  %432 = vmatprep.mubr.msk.f32.mxu1 %vm606_vm0, %v607_v1  ;;  %p576_p7 = por %p575_p6, %p574_p5 }
  0x52   :  { %430 = vmatprep.subr.mxu1 %v607_v1 }
  0x53   :  { %p577_p8 = pnand %p576_p7, %p570_p4 }
  0x55   :  { %431 = vmatpush3.msra.mxu1 %v154_v9 }
  0x56   :  { %433 = vmatmul.mubr.msk.f32.vlgmr.msra.gmra.mrb[2].mxu1 %vm155_vm2, %v151_v10 }
 0x123   :  { %v147_v14 = vpop.f32.mrb[0].mxu1 }
 0x124   :  { %v425_v15 = vpop.f32.mrb[1].mxu1  ;;  %v232_v22 = vrot.slane %v147_v14, %v231_v16  ;;  %v238_v23 = vrot.slane %v147_v14, %v237_v17  ;;  %v244_v24 = vrot.slane %v147_v14, %v243_v18  ;;  %v250_v25 = vrot.slane %v147_v14, %v249_v19 }
 0x125   :  { %v256_v27 = vrot.slane %v147_v14, %v255_v20  ;;  %v262_v28 = vrot.slane %v147_v14, %v261_v21 }
 0x129   :  { %v225_v26 = vpop.f32.mrb[2].mxu1 }
 0x12a   :  { %v434_v29 = vpop.f32.mrb[3].mxu1  ;;  %v233_v30 = vmul.f32 %v232_v22, %v225_v26  ;;  %v239_v31 = vmul.f32 %v238_v23, %v225_v26  ;;  %v245_v32 = vmul.f32 %v244_v24, %v225_v26  ;;  %v251_v33 = vmul.f32 %v250_v25, %v225_v26 }
 0x12b   :  { %v257_v34 = vmul.f32 %v256_v27, %v225_v26  ;;  %v263_v35 = vmul.f32 %v262_v28, %v225_v26 }
 0x12c   :  { %v459_v36 = vpack.c.bf16 %v239_v31, %v233_v30  ;;  %v463_v37 = vpack.c.bf16 %v251_v33, %v245_v32 }
 0x12d   :  { %v467_v38 = vpack.c.bf16 %v263_v35, %v257_v34 }
 0x12e   :  { %460 = vmatprep.subr.bf16.mxu0 %v459_v36 }
 0x12f   :  { %462 = vmatpush3.bf16.msra.mxu0 %v459_v36 }
 0x130   :  { %464 = vmatprep.subr.bf16.mxu0 %v463_v37 }
 0x133   :  { %466 = vmatpush3.bf16.msra.mxu0 %v463_v37 }
 0x134   :  { %468 = vmatprep.subr.bf16.mxu0 %v467_v38 }
 0x137   :  { %470 = vmatpush3.bf16.msra.mxu0 %v467_v38 }
 0x13a   :  { %448 = vmatmul.mubr.msk.f32.vlgmr.msra.gmra.mrb[0].mxu0 %vm275_vm3, %v266_v39 }
 0x13b   :  { %450 = vmatprep.mubr.msk.f32.mxu0 %vm275_vm3, %v267_v40 }
 0x13e   :  { %451 = vmatmul.mubr.msk.f32.gmra.mrb[2].mxu0 %vm275_vm3, %v268_v41 }
 0x20d   :  { %v449_v42 = vpop.f32.mrb[0].mxu0 }
 0x20e   :  { %374 = vst [vmem:[#allocation11 + $0x8] sm:$0xff] %v449_v42  ;;  %v354_v43 = vpop.f32.mrb[1].mxu0 }
 0x20f   :  { %373 = vst [vmem:[#allocation11] sm:$0xff] %v354_v43 }
 0x211   :  { %v452_v44 = vpop.f32.mrb[2].mxu0 }
 0x212   :  { %376 = vst [vmem:[#allocation11 + $0x18] sm:$0xff] %v452_v44  ;;  %v364_v45 = vpop.f32.mrb[3].mxu0 }
 0x213   :  { %375 = vst [vmem:[#allocation11 + $0x10] sm:$0xff] %v364_v45 }
 0x214   :  { %580 = shalt.err (!%p577_p8)
}
 0x215   :  { %s581_s22 = scalar_lea.hbm %s737_s5, 512 }
 0x216   :  { %p582_p9 = scmp.ne.s32.totalorder %s737_s5, %s581_s22  ;;  %p585_p10 = scmp.lt.u32.totalorder %s581_s22, %s737_s5 }
 0x218   :  { %p587_p11 = pnand %p585_p10, %p582_p9 }
 0x21a   :  { %590 = shalt.err (!%p587_p11)
}
 0x21b   :  { %388 = dma.vmem_to_hbm [thread:$0]  %s383_s17, 512, %s737_s5, [#allocation5], %s601_s30, %s601_s30, %s602_s6  }
 0x21c   :  { %597 = dma.done.wait [#allocation5], 512  }
 0x21d   :  { %598 = vsyncadd [#allocation5], 4294966784 }
 0x21e   :  { %392 = vsyncpa [#allocation4], 1 }
 0x21f   :  { %393 = vsyncpa [#allocation7], 1 }
 0x220   :  { %394 = vsyncpa [#allocation10], 1 }
 0x221   :  { %395 = vsyncpa [#allocation5], 1 }

</bundles_post_ra>
